<compile_context>
chip_gen: v7x
topology: tpu7x:2x2x1
jax: 0.10.0
libtpu: 0.0.40
codegen_flags: <defaults>
</compile_context>

<pallas_src>
import functools
import math

import jax
import jax.numpy as jnp
from jax import lax
from jax.experimental import pallas as pl
from jax.experimental.pallas import tpu as pltpu


def _encoder_layer_kernel(
    # inputs
    x_ref,
    wqkv_ref, bqkv_ref, wo_ref, bo_ref,
    g1_ref, be1_ref,
    w1_ref, bf1_ref, w2_ref, bf2_ref,
    g2_ref, be2_ref,
    # outputs
    out_ref, attn_ref,
    # scratch
    acc_ref,
    *, num_heads, head_dim,
):
    """One grid step = one (batch element, head) pair.

    Per step: per-head fused QKV projection -> scores -> softmax -> context,
    accumulated into wo's row slice.  On the last head of each batch element the
    residual + LayerNorm1 + FFN + residual + LayerNorm2 epilogue runs.
    """
    h = pl.program_id(1)

    x_f32 = x_ref[0].astype(jnp.float32)          # (S, D) residual path stays f32
    x_bf16 = x_f32.astype(jnp.bfloat16)           # bf16 copy for MXU inputs

    # --- per-head fused Q/K/V projection: (S, D) @ (D, 3*hd), bf16 in / f32 acc ---
    # 1/sqrt(head_dim) is already folded into the Q columns (weights AND bias).
    qkv = jnp.dot(x_bf16, wqkv_ref[0], preferred_element_type=jnp.float32)
    qkv = qkv + bqkv_ref[0]                       # (S, 3*hd) f32

    q = qkv[:, :head_dim].astype(jnp.bfloat16)
    k = qkv[:, head_dim:2 * head_dim].astype(jnp.bfloat16)
    v = qkv[:, 2 * head_dim:3 * head_dim].astype(jnp.bfloat16)

    # q @ k^T without materializing a transpose: contract head_dim of both operands.
    s = lax.dot_general(q, k, (((1,), (1,)), ((), ())),
                        preferred_element_type=jnp.float32)              # (S, S)
    s = s - jnp.max(s, axis=-1, keepdims=True)
    p = jnp.exp(s)
    # Exact reciprocal: stored probabilities sum to 1 (review correctness note).
    p = p * pl.reciprocal(jnp.sum(p, axis=-1, keepdims=True))

    attn_ref[0, 0] = p.astype(attn_ref.dtype)

    ctx = jnp.dot(p.astype(jnp.bfloat16), v,
                  preferred_element_type=jnp.float32)                    # (S, hd)

    # Accumulate this head's contribution to the output projection:
    #   acc += ctx_h @ wo[h*hd:(h+1)*hd, :]
    part = jnp.dot(ctx.astype(jnp.bfloat16), wo_ref[0],
                   preferred_element_type=jnp.float32)                   # (S, D)

    @pl.when(h == 0)
    def _():
        acc_ref[...] = part

    @pl.when(h > 0)
    def _():
        acc_ref[...] = acc_ref[...] + part

    # --- epilogue on the last head: residual + LN1 + FFN + residual + LN2 ---
    @pl.when(h == num_heads - 1)
    def _():
        x1 = acc_ref[...] + bo_ref[...]
        h1 = x_f32 + x1
        mu1 = jnp.mean(h1, axis=-1, keepdims=True)
        var1 = jnp.mean((h1 - mu1) ** 2, axis=-1, keepdims=True)
        xn1 = (h1 - mu1) * lax.rsqrt(var1 + 1e-5) * g1_ref[...] + be1_ref[...]

        ff = jnp.dot(xn1.astype(jnp.bfloat16), w1_ref[...],
                     preferred_element_type=jnp.float32) + bf1_ref[...]
        ff = jnp.maximum(ff, 0.0)
        ff = jnp.dot(ff.astype(jnp.bfloat16), w2_ref[...],
                     preferred_element_type=jnp.float32) + bf2_ref[...]

        h2 = xn1 + ff
        mu2 = jnp.mean(h2, axis=-1, keepdims=True)
        var2 = jnp.mean((h2 - mu2) ** 2, axis=-1, keepdims=True)
        out = (h2 - mu2) * lax.rsqrt(var2 + 1e-5) * g2_ref[...] + be2_ref[...]

        out_ref[0] = out.astype(out_ref.dtype)


def encoder_layer(x, params, *, num_heads, attn_dtype=jnp.bfloat16):
    """x: (B, S, D) float32. Returns (out (B,S,D) f32, attn (B,H,S,S) attn_dtype)."""
    B, S, D = x.shape
    assert D % num_heads == 0
    head_dim = D // num_heads
    scale = 1.0 / math.sqrt(head_dim)

    def per_head_cols(w):   # (D, D) -> (H, D, hd); [h] = w[:, h*hd:(h+1)*hd]
        return w.reshape(D, num_heads, head_dim).transpose(1, 0, 2)

    def per_head_bias(b):   # (1, D) -> (H, 1, hd)
        return b.reshape(1, num_heads, head_dim).transpose(1, 0, 2)

    # Fold 1/sqrt(hd) into the Q weights AND Q bias before the bf16 cast.
    wqkv = jnp.concatenate(
        [per_head_cols(params["wq"] * scale),
         per_head_cols(params["wk"]),
         per_head_cols(params["wv"])], axis=2).astype(jnp.bfloat16)    # (H, D, 3hd)
    bqkv = jnp.concatenate(
        [per_head_bias(params["bq"] * scale),
         per_head_bias(params["bk"]),
         per_head_bias(params["bv"])], axis=2).astype(jnp.float32)     # (H, 1, 3hd)
    wo_h = params["wo"].reshape(num_heads, head_dim, D).astype(jnp.bfloat16)

    weights = [
        wqkv, bqkv, wo_h,
        params["bo"].astype(jnp.float32),
        params["g1"].astype(jnp.float32), params["be1"].astype(jnp.float32),
        params["w1"].astype(jnp.bfloat16), params["bf1"].astype(jnp.float32),
        params["w2"].astype(jnp.bfloat16), params["bf2"].astype(jnp.float32),
        params["g2"].astype(jnp.float32), params["be2"].astype(jnp.float32),
    ]

    def head_spec(shape):
        # Per-head block: first axis indexed by the head grid coordinate.
        n = len(shape) - 1
        return pl.BlockSpec((1,) + shape[1:], lambda b, h, n=n: (h,) + (0,) * n)

    def const_spec(shape):
        # Grid-invariant block: stays resident in VMEM (no re-DMA).
        n = len(shape)
        return pl.BlockSpec(shape, lambda b, h, n=n: (0,) * n)

    in_specs = (
        [pl.BlockSpec((1, S, D), lambda b, h: (b, 0, 0))]      # x
        + [head_spec(wqkv.shape), head_spec(bqkv.shape), head_spec(wo_h.shape)]
        + [const_spec(w.shape) for w in weights[3:]]
    )
    out_specs = (
        pl.BlockSpec((1, S, D), lambda b, h: (b, 0, 0)),        # out (resident over h)
        pl.BlockSpec((1, 1, S, S), lambda b, h: (b, h, 0, 0)),  # attn probs
    )

    kernel = functools.partial(
        _encoder_layer_kernel, num_heads=num_heads, head_dim=head_dim)

    return pl.pallas_call(
        kernel,
        grid=(B, num_heads),
        in_specs=in_specs,
        out_specs=out_specs,
        out_shape=(
            jax.ShapeDtypeStruct((B, S, D), jnp.float32),
            jax.ShapeDtypeStruct((B, num_heads, S, S), attn_dtype),
        ),
        scratch_shapes=[pltpu.VMEM((S, D), jnp.float32)],
        compiler_params=pltpu.CompilerParams(
            # Head axis carries the wo accumulation -> arbitrary; batch is parallel.
            dimension_semantics=("parallel", "arbitrary"),
            vmem_limit_bytes=32 * 1024 * 1024,
        ),
    )(x, *weights)


def init_params(key, d_model):
    """Deterministic parameter init (shapes follow the PyTorch module)."""
    ks = jax.random.split(key, 8)
    scale = 0.05

    def w(k):
        return (scale * jax.random.normal(k, (d_model, d_model))).astype(jnp.float32)

    zeros_row = jnp.zeros((1, d_model), jnp.float32)
    ones_row = jnp.ones((1, d_model), jnp.float32)
    return {
        # attention projections
        "wq": w(ks[0]), "bq": zeros_row,
        "wk": w(ks[1]), "bk": zeros_row,
        "wv": w(ks[2]), "bv": zeros_row,
        "wo": w(ks[3]), "bo": zeros_row,
        # norm1
        "g1": ones_row, "be1": zeros_row,
        # feed-forward (d_model -> d_model -> d_model)
        "w1": w(ks[4]), "bf1": zeros_row,
        "w2": w(ks[5]), "bf2": zeros_row,
        # norm2
        "g2": ones_row, "be2": zeros_row,
    }


def reference_encoder_layer(x, params, *, num_heads):
    """Pure-JAX f32 reference for a sanity check."""
    B, S, D = x.shape
    hd = D // num_heads
    q = x @ params["wq"] + params["bq"]
    k = x @ params["wk"] + params["bk"]
    v = x @ params["wv"] + params["bv"]

    def split(t):  # (B,S,D) -> (B,H,S,hd)
        return t.reshape(B, S, num_heads, hd).transpose(0, 2, 1, 3)

    qh, kh, vh = split(q), split(k), split(v)
    s = jnp.einsum("bhqd,bhkd->bhqk", qh, kh) / math.sqrt(hd)
    p = jax.nn.softmax(s, axis=-1)
    ctx = jnp.einsum("bhqk,bhkd->bhqd", p, vh).transpose(0, 2, 1, 3).reshape(B, S, D)
    x1 = ctx @ params["wo"] + params["bo"]

    def ln(t, g, b):
        mu = t.mean(-1, keepdims=True)
        var = ((t - mu) ** 2).mean(-1, keepdims=True)
        return (t - mu) / jnp.sqrt(var + 1e-5) * g + b

    xn1 = ln(x + x1, params["g1"], params["be1"])
    ff = jnp.maximum(xn1 @ params["w1"] + params["bf1"], 0.0) @ params["w2"] + params["bf2"]
    out = ln(xn1 + ff, params["g2"], params["be2"])
    return out, p


if __name__ == "__main__":
    # Small demo shapes (real perf characterization should use S, D multiples of 128).
    B, S, D, H = 2, 16, 64, 4  # batch, seq, d_model, num_heads

    key = jax.random.PRNGKey(0)
    kx, kp = jax.random.split(key)
    x = jax.random.normal(kx, (B, S, D), dtype=jnp.float32)
    params = init_params(kp, D)

    out, attn = encoder_layer(x, params, num_heads=H)
    out = jax.block_until_ready(out)
    attn = jax.block_until_ready(attn)

    ref_out, ref_attn = reference_encoder_layer(x, params, num_heads=H)
    assert out.shape == (B, S, D) and attn.shape == (B, H, S, S)
    # Tolerances loosened for bf16 MXU inputs and bf16-stored attention probabilities.
    assert jnp.allclose(out, ref_out, atol=3e-2, rtol=3e-2)
    assert jnp.allclose(attn.astype(jnp.float32), ref_attn, atol=2e-2, rtol=2e-2)

    print("KERNEL_OK")
</pallas_src>

<mosaic_0001>
module attributes {stable_mosaic.version = 11 : i64} {
  func.func @_encoder_layer_kernel(%arg0: i32, %arg1: i32, %arg2: memref<1x16x64xf32, #tpu.memory_space<vmem>>, %arg3: memref<1x64x48xbf16, #tpu.memory_space<vmem>>, %arg4: memref<1x1x48xf32, #tpu.memory_space<vmem>>, %arg5: memref<1x16x64xbf16, #tpu.memory_space<vmem>>, %arg6: memref<1x64xf32, #tpu.memory_space<vmem>>, %arg7: memref<1x64xf32, #tpu.memory_space<vmem>>, %arg8: memref<1x64xf32, #tpu.memory_space<vmem>>, %arg9: memref<64x64xbf16, #tpu.memory_space<vmem>>, %arg10: memref<1x64xf32, #tpu.memory_space<vmem>>, %arg11: memref<64x64xbf16, #tpu.memory_space<vmem>>, %arg12: memref<1x64xf32, #tpu.memory_space<vmem>>, %arg13: memref<1x64xf32, #tpu.memory_space<vmem>>, %arg14: memref<1x64xf32, #tpu.memory_space<vmem>>, %arg15: memref<1x16x64xf32, #tpu.memory_space<vmem>>, %arg16: memref<1x1x16x16xbf16, #tpu.memory_space<vmem>>, %arg17: memref<16x64xf32, #tpu.memory_space<vmem>>) attributes {dimension_semantics = [#tpu.dimension_semantics<parallel>, #tpu.dimension_semantics<arbitrary>], iteration_bounds = array<i64: 2, 4>, scalar_prefetch = 0 : i64, scratch_operands = 1 : i64, tpu.core_type = #tpu.core_type<tc>, window_params = [{transform_indices = @transform_0, window_bounds = array<i64: 1, 16, 64>}, {transform_indices = @transform_1, window_bounds = array<i64: 1, 64, 48>}, {transform_indices = @transform_2, window_bounds = array<i64: 1, 1, 48>}, {transform_indices = @transform_3, window_bounds = array<i64: 1, 16, 64>}, {pipeline_mode = #tpu.pipeline_mode<synchronous>, transform_indices = @transform_4, window_bounds = array<i64: 1, 64>}, {pipeline_mode = #tpu.pipeline_mode<synchronous>, transform_indices = @transform_5, window_bounds = array<i64: 1, 64>}, {pipeline_mode = #tpu.pipeline_mode<synchronous>, transform_indices = @transform_6, window_bounds = array<i64: 1, 64>}, {pipeline_mode = #tpu.pipeline_mode<synchronous>, transform_indices = @transform_7, window_bounds = array<i64: 64, 64>}, {pipeline_mode = #tpu.pipeline_mode<synchronous>, transform_indices = @transform_8, window_bounds = array<i64: 1, 64>}, {pipeline_mode = #tpu.pipeline_mode<synchronous>, transform_indices = @transform_9, window_bounds = array<i64: 64, 64>}, {pipeline_mode = #tpu.pipeline_mode<synchronous>, transform_indices = @transform_10, window_bounds = array<i64: 1, 64>}, {pipeline_mode = #tpu.pipeline_mode<synchronous>, transform_indices = @transform_11, window_bounds = array<i64: 1, 64>}, {pipeline_mode = #tpu.pipeline_mode<synchronous>, transform_indices = @transform_12, window_bounds = array<i64: 1, 64>}, {transform_indices = @transform_13, window_bounds = array<i64: 1, 16, 64>}, {transform_indices = @transform_14, window_bounds = array<i64: 1, 1, 16, 16>}]} {
    %c0 = arith.constant 0 : index
    %c0_0 = arith.constant 0 : index
    %c0_1 = arith.constant 0 : index
    %0 = vector.load %arg2[%c0, %c0_0, %c0_1] : memref<1x16x64xf32, #tpu.memory_space<vmem>>, vector<1x16x64xf32>
    %1 = vector.shape_cast %0 : vector<1x16x64xf32> to vector<16x64xf32>
    %2 = arith.truncf %1 : vector<16x64xf32> to vector<16x64xbf16>
    %c0_2 = arith.constant 0 : index
    %c0_3 = arith.constant 0 : index
    %c0_4 = arith.constant 0 : index
    %3 = vector.load %arg3[%c0_2, %c0_3, %c0_4] : memref<1x64x48xbf16, #tpu.memory_space<vmem>>, vector<1x64x48xbf16>
    %4 = vector.shape_cast %3 : vector<1x64x48xbf16> to vector<64x48xbf16>
    %cst = arith.constant dense<0.000000e+00> : vector<16x48xf32>
    %5 = tpu.matmul %2, %4, %cst {dimension_numbers = #tpu.dot_dimension_numbers<[1], [0], [0], [1], [0, 0, 1, 1], [], []>} : vector<16x64xbf16>, vector<64x48xbf16>, vector<16x48xf32> -> vector<16x48xf32>
    %c0_5 = arith.constant 0 : index
    %c0_6 = arith.constant 0 : index
    %c0_7 = arith.constant 0 : index
    %6 = vector.load %arg4[%c0_5, %c0_6, %c0_7] : memref<1x1x48xf32, #tpu.memory_space<vmem>>, vector<1x1x48xf32>
    %7 = vector.shape_cast %6 : vector<1x1x48xf32> to vector<1x48xf32>
    %8 = vector.broadcast %7 : vector<1x48xf32> to vector<16x48xf32>
    %9 = arith.addf %5, %8 : vector<16x48xf32>
    %10 = vector.extract_strided_slice %9 {offsets = [0, 0], sizes = [16, 16], strides = [1, 1]} : vector<16x48xf32> to vector<16x16xf32>
    %11 = arith.truncf %10 : vector<16x16xf32> to vector<16x16xbf16>
    %12 = vector.extract_strided_slice %9 {offsets = [0, 16], sizes = [16, 16], strides = [1, 1]} : vector<16x48xf32> to vector<16x16xf32>
    %13 = arith.truncf %12 : vector<16x16xf32> to vector<16x16xbf16>
    %14 = vector.extract_strided_slice %9 {offsets = [0, 32], sizes = [16, 16], strides = [1, 1]} : vector<16x48xf32> to vector<16x16xf32>
    %15 = arith.truncf %14 : vector<16x16xf32> to vector<16x16xbf16>
    %cst_8 = arith.constant dense<0.000000e+00> : vector<16x16xf32>
    %16 = tpu.matmul %11, %13, %cst_8 {dimension_numbers = #tpu.dot_dimension_numbers<[1], [1], [0], [0], [0, 0, 1, 0], [], []>} : vector<16x16xbf16>, vector<16x16xbf16>, vector<16x16xf32> -> vector<16x16xf32>
    %cst_9 = arith.constant dense<0xFF800000> : vector<16xf32>
    %17 = vector.multi_reduction <maximumf>, %16, %cst_9 [1] : vector<16x16xf32> to vector<16xf32>
    %18 = vector.shape_cast %17 : vector<16xf32> to vector<16x1xf32>
    %19 = vector.broadcast %18 : vector<16x1xf32> to vector<16x16xf32>
    %20 = arith.subf %16, %19 : vector<16x16xf32>
    %21 = math.exp %20 : vector<16x16xf32>
    %cst_10 = arith.constant dense<0.000000e+00> : vector<16xf32>
    %22 = vector.multi_reduction <add>, %21, %cst_10 [1] : vector<16x16xf32> to vector<16xf32>
    %23 = vector.shape_cast %22 : vector<16xf32> to vector<16x1xf32>
    %24 = tpu.reciprocal %23 : vector<16x1xf32> -> vector<16x1xf32>
    %25 = vector.broadcast %24 : vector<16x1xf32> to vector<16x16xf32>
    %26 = arith.mulf %21, %25 : vector<16x16xf32>
    %27 = arith.truncf %26 : vector<16x16xf32> to vector<16x16xbf16>
    %c0_11 = arith.constant 0 : index
    %c0_12 = arith.constant 0 : index
    %c0_13 = arith.constant 0 : index
    %c0_14 = arith.constant 0 : index
    %28 = vector.load %arg16[%c0_11, %c0_12, %c0_13, %c0_14] : memref<1x1x16x16xbf16, #tpu.memory_space<vmem>>, vector<1x1x16x16xbf16>
    %29 = vector.shape_cast %28 : vector<1x1x16x16xbf16> to vector<16x16xbf16>
    %30 = vector.shape_cast %27 : vector<16x16xbf16> to vector<1x1x16x16xbf16>
    tpu.vector_store %arg16[%c0_11, %c0_12, %c0_13, %c0_14], %30 {strides = array<i32>} : memref<1x1x16x16xbf16, #tpu.memory_space<vmem>>, vector<1x1x16x16xbf16>,
    %31 = arith.truncf %26 : vector<16x16xf32> to vector<16x16xbf16>
    %cst_15 = arith.constant dense<0.000000e+00> : vector<16x16xf32>
    %32 = tpu.matmul %31, %15, %cst_15 {dimension_numbers = #tpu.dot_dimension_numbers<[1], [0], [0], [1], [0, 0, 1, 1], [], []>} : vector<16x16xbf16>, vector<16x16xbf16>, vector<16x16xf32> -> vector<16x16xf32>
    %33 = arith.truncf %32 : vector<16x16xf32> to vector<16x16xbf16>
    %c0_16 = arith.constant 0 : index
    %c0_17 = arith.constant 0 : index
    %c0_18 = arith.constant 0 : index
    %34 = vector.load %arg5[%c0_16, %c0_17, %c0_18] : memref<1x16x64xbf16, #tpu.memory_space<vmem>>, vector<1x16x64xbf16>
    %35 = vector.shape_cast %34 : vector<1x16x64xbf16> to vector<16x64xbf16>
    %cst_19 = arith.constant dense<0.000000e+00> : vector<16x64xf32>
    %36 = tpu.matmul %33, %35, %cst_19 {dimension_numbers = #tpu.dot_dimension_numbers<[1], [0], [0], [1], [0, 0, 1, 1], [], []>} : vector<16x16xbf16>, vector<16x64xbf16>, vector<16x64xf32> -> vector<16x64xf32>
    %c0_i32 = arith.constant 0 : i32
    %37 = arith.cmpi eq, %arg1, %c0_i32 : i32
    %38 = arith.extui %37 : i1 to i32
    %c0_i32_20 = arith.constant 0 : i32
    %39 = arith.cmpi ne, %38, %c0_i32_20 : i32
    scf.if %39 {
      %c0_24 = arith.constant 0 : index
      %c0_25 = arith.constant 0 : index
      %46 = vector.load %arg17[%c0_24, %c0_25] : memref<16x64xf32, #tpu.memory_space<vmem>>, vector<16x64xf32>
      tpu.vector_store %arg17[%c0_24, %c0_25], %36 {strides = array<i32>} : memref<16x64xf32, #tpu.memory_space<vmem>>, vector<16x64xf32>,
    } else {
    }
    %c0_i32_21 = arith.constant 0 : i32
    %40 = arith.cmpi sgt, %arg1, %c0_i32_21 : i32
    %41 = arith.extui %40 : i1 to i32
    %c0_i32_22 = arith.constant 0 : i32
    %42 = arith.cmpi ne, %41, %c0_i32_22 : i32
    scf.if %42 {
      %c0_24 = arith.constant 0 : index
      %c0_25 = arith.constant 0 : index
      %46 = vector.load %arg17[%c0_24, %c0_25] : memref<16x64xf32, #tpu.memory_space<vmem>>, vector<16x64xf32>
      %47 = arith.addf %46, %36 : vector<16x64xf32>
      %c0_26 = arith.constant 0 : index
      %c0_27 = arith.constant 0 : index
      %48 = vector.load %arg17[%c0_26, %c0_27] : memref<16x64xf32, #tpu.memory_space<vmem>>, vector<16x64xf32>
      tpu.vector_store %arg17[%c0_26, %c0_27], %47 {strides = array<i32>} : memref<16x64xf32, #tpu.memory_space<vmem>>, vector<16x64xf32>,
    } else {
    }
    %c3_i32 = arith.constant 3 : i32
    %43 = arith.cmpi eq, %arg1, %c3_i32 : i32
    %44 = arith.extui %43 : i1 to i32
    %c0_i32_23 = arith.constant 0 : i32
    %45 = arith.cmpi ne, %44, %c0_i32_23 : i32
    scf.if %45 {
      %c0_24 = arith.constant 0 : index
      %c0_25 = arith.constant 0 : index
      %46 = vector.load %arg17[%c0_24, %c0_25] : memref<16x64xf32, #tpu.memory_space<vmem>>, vector<16x64xf32>
      %c0_26 = arith.constant 0 : index
      %c0_27 = arith.constant 0 : index
      %47 = vector.load %arg6[%c0_26, %c0_27] : memref<1x64xf32, #tpu.memory_space<vmem>>, vector<1x64xf32>
      %48 = vector.broadcast %47 : vector<1x64xf32> to vector<16x64xf32>
      %49 = arith.addf %46, %48 : vector<16x64xf32>
      %50 = arith.addf %1, %49 : vector<16x64xf32>
      %cst_28 = arith.constant dense<0.000000e+00> : vector<16xf32>
      %51 = vector.multi_reduction <add>, %50, %cst_28 [1] : vector<16x64xf32> to vector<16xf32>
      %52 = vector.shape_cast %51 : vector<16xf32> to vector<16x1xf32>
      %cst_29 = arith.constant 6.400000e+01 : f32
      %53 = vector.broadcast %cst_29 : f32 to vector<16x1xf32>
      %54 = arith.divf %52, %53 : vector<16x1xf32>
      %55 = vector.broadcast %54 : vector<16x1xf32> to vector<16x64xf32>
      %56 = arith.subf %50, %55 : vector<16x64xf32>
      %57 = arith.mulf %56, %56 : vector<16x64xf32>
      %cst_30 = arith.constant dense<0.000000e+00> : vector<16xf32>
      %58 = vector.multi_reduction <add>, %57, %cst_30 [1] : vector<16x64xf32> to vector<16xf32>
      %59 = vector.shape_cast %58 : vector<16xf32> to vector<16x1xf32>
      %cst_31 = arith.constant 6.400000e+01 : f32
      %60 = vector.broadcast %cst_31 : f32 to vector<16x1xf32>
      %61 = arith.divf %59, %60 : vector<16x1xf32>
      %62 = vector.broadcast %54 : vector<16x1xf32> to vector<16x64xf32>
      %63 = arith.subf %50, %62 : vector<16x64xf32>
      %cst_32 = arith.constant 9.99999974E-6 : f32
      %64 = vector.broadcast %cst_32 : f32 to vector<16x1xf32>
      %65 = arith.addf %61, %64 : vector<16x1xf32>
      %66 = math.rsqrt %65 : vector<16x1xf32>
      %67 = vector.broadcast %66 : vector<16x1xf32> to vector<16x64xf32>
      %68 = arith.mulf %63, %67 : vector<16x64xf32>
      %c0_33 = arith.constant 0 : index
      %c0_34 = arith.constant 0 : index
      %69 = vector.load %arg7[%c0_33, %c0_34] : memref<1x64xf32, #tpu.memory_space<vmem>>, vector<1x64xf32>
      %70 = vector.broadcast %69 : vector<1x64xf32> to vector<16x64xf32>
      %71 = arith.mulf %68, %70 : vector<16x64xf32>
      %c0_35 = arith.constant 0 : index
      %c0_36 = arith.constant 0 : index
      %72 = vector.load %arg8[%c0_35, %c0_36] : memref<1x64xf32, #tpu.memory_space<vmem>>, vector<1x64xf32>
      %73 = vector.broadcast %72 : vector<1x64xf32> to vector<16x64xf32>
      %74 = arith.addf %71, %73 : vector<16x64xf32>
      %75 = arith.truncf %74 : vector<16x64xf32> to vector<16x64xbf16>
      %c0_37 = arith.constant 0 : index
      %c0_38 = arith.constant 0 : index
      %76 = vector.load %arg9[%c0_37, %c0_38] : memref<64x64xbf16, #tpu.memory_space<vmem>>, vector<64x64xbf16>
      %cst_39 = arith.constant dense<0.000000e+00> : vector<16x64xf32>
      %77 = tpu.matmul %75, %76, %cst_39 {dimension_numbers = #tpu.dot_dimension_numbers<[1], [0], [0], [1], [0, 0, 1, 1], [], []>} : vector<16x64xbf16>, vector<64x64xbf16>, vector<16x64xf32> -> vector<16x64xf32>
      %c0_40 = arith.constant 0 : index
      %c0_41 = arith.constant 0 : index
      %78 = vector.load %arg10[%c0_40, %c0_41] : memref<1x64xf32, #tpu.memory_space<vmem>>, vector<1x64xf32>
      %79 = vector.broadcast %78 : vector<1x64xf32> to vector<16x64xf32>
      %80 = arith.addf %77, %79 : vector<16x64xf32>
      %cst_42 = arith.constant 0.000000e+00 : f32
      %81 = vector.broadcast %cst_42 : f32 to vector<16x64xf32>
      %82 = arith.maximumf %80, %81 : vector<16x64xf32>
      %83 = arith.truncf %82 : vector<16x64xf32> to vector<16x64xbf16>
      %c0_43 = arith.constant 0 : index
      %c0_44 = arith.constant 0 : index
      %84 = vector.load %arg11[%c0_43, %c0_44] : memref<64x64xbf16, #tpu.memory_space<vmem>>, vector<64x64xbf16>
      %cst_45 = arith.constant dense<0.000000e+00> : vector<16x64xf32>
      %85 = tpu.matmul %83, %84, %cst_45 {dimension_numbers = #tpu.dot_dimension_numbers<[1], [0], [0], [1], [0, 0, 1, 1], [], []>} : vector<16x64xbf16>, vector<64x64xbf16>, vector<16x64xf32> -> vector<16x64xf32>
      %c0_46 = arith.constant 0 : index
      %c0_47 = arith.constant 0 : index
      %86 = vector.load %arg12[%c0_46, %c0_47] : memref<1x64xf32, #tpu.memory_space<vmem>>, vector<1x64xf32>
      %87 = vector.broadcast %86 : vector<1x64xf32> to vector<16x64xf32>
      %88 = arith.addf %85, %87 : vector<16x64xf32>
      %89 = arith.addf %74, %88 : vector<16x64xf32>
      %cst_48 = arith.constant dense<0.000000e+00> : vector<16xf32>
      %90 = vector.multi_reduction <add>, %89, %cst_48 [1] : vector<16x64xf32> to vector<16xf32>
      %91 = vector.shape_cast %90 : vector<16xf32> to vector<16x1xf32>
      %cst_49 = arith.constant 6.400000e+01 : f32
      %92 = vector.broadcast %cst_49 : f32 to vector<16x1xf32>
      %93 = arith.divf %91, %92 : vector<16x1xf32>
      %94 = vector.broadcast %93 : vector<16x1xf32> to vector<16x64xf32>
      %95 = arith.subf %89, %94 : vector<16x64xf32>
      %96 = arith.mulf %95, %95 : vector<16x64xf32>
      %cst_50 = arith.constant dense<0.000000e+00> : vector<16xf32>
      %97 = vector.multi_reduction <add>, %96, %cst_50 [1] : vector<16x64xf32> to vector<16xf32>
      %98 = vector.shape_cast %97 : vector<16xf32> to vector<16x1xf32>
      %cst_51 = arith.constant 6.400000e+01 : f32
      %99 = vector.broadcast %cst_51 : f32 to vector<16x1xf32>
      %100 = arith.divf %98, %99 : vector<16x1xf32>
      %101 = vector.broadcast %93 : vector<16x1xf32> to vector<16x64xf32>
      %102 = arith.subf %89, %101 : vector<16x64xf32>
      %cst_52 = arith.constant 9.99999974E-6 : f32
      %103 = vector.broadcast %cst_52 : f32 to vector<16x1xf32>
      %104 = arith.addf %100, %103 : vector<16x1xf32>
      %105 = math.rsqrt %104 : vector<16x1xf32>
      %106 = vector.broadcast %105 : vector<16x1xf32> to vector<16x64xf32>
      %107 = arith.mulf %102, %106 : vector<16x64xf32>
      %c0_53 = arith.constant 0 : index
      %c0_54 = arith.constant 0 : index
      %108 = vector.load %arg13[%c0_53, %c0_54] : memref<1x64xf32, #tpu.memory_space<vmem>>, vector<1x64xf32>
      %109 = vector.broadcast %108 : vector<1x64xf32> to vector<16x64xf32>
      %110 = arith.mulf %107, %109 : vector<16x64xf32>
      %c0_55 = arith.constant 0 : index
      %c0_56 = arith.constant 0 : index
      %111 = vector.load %arg14[%c0_55, %c0_56] : memref<1x64xf32, #tpu.memory_space<vmem>>, vector<1x64xf32>
      %112 = vector.broadcast %111 : vector<1x64xf32> to vector<16x64xf32>
      %113 = arith.addf %110, %112 : vector<16x64xf32>
      %c0_57 = arith.constant 0 : index
      %c0_58 = arith.constant 0 : index
      %c0_59 = arith.constant 0 : index
      %114 = vector.load %arg15[%c0_57, %c0_58, %c0_59] : memref<1x16x64xf32, #tpu.memory_space<vmem>>, vector<1x16x64xf32>
      %115 = vector.shape_cast %114 : vector<1x16x64xf32> to vector<16x64xf32>
      %116 = vector.shape_cast %113 : vector<16x64xf32> to vector<1x16x64xf32>
      tpu.vector_store %arg15[%c0_57, %c0_58, %c0_59], %116 {strides = array<i32>} : memref<1x16x64xf32, #tpu.memory_space<vmem>>, vector<1x16x64xf32>,
    } else {
    }
    return
  }
  func.func @transform_0(%arg0: i32, %arg1: i32) -> (i32, i32, i32) {
    %c0_i32 = arith.constant 0 : i32
    %c0_i32_0 = arith.constant 0 : i32
    %c0_i32_1 = arith.constant 0 : i32
    return %arg0, %c0_i32, %c0_i32_0 : i32, i32, i32
  }
  func.func @transform_1(%arg0: i32, %arg1: i32) -> (i32, i32, i32) {
    %c0_i32 = arith.constant 0 : i32
    %c0_i32_0 = arith.constant 0 : i32
    %c0_i32_1 = arith.constant 0 : i32
    return %arg1, %c0_i32, %c0_i32_0 : i32, i32, i32
  }
  func.func @transform_2(%arg0: i32, %arg1: i32) -> (i32, i32, i32) {
    %c0_i32 = arith.constant 0 : i32
    %c0_i32_0 = arith.constant 0 : i32
    %c0_i32_1 = arith.constant 0 : i32
    return %arg1, %c0_i32, %c0_i32_0 : i32, i32, i32
  }
  func.func @transform_3(%arg0: i32, %arg1: i32) -> (i32, i32, i32) {
    %c0_i32 = arith.constant 0 : i32
    %c0_i32_0 = arith.constant 0 : i32
    %c0_i32_1 = arith.constant 0 : i32
    return %arg1, %c0_i32, %c0_i32_0 : i32, i32, i32
  }
  func.func @transform_4(%arg0: i32, %arg1: i32) -> (i32, i32) {
    %c0_i32 = arith.constant 0 : i32
    %c0_i32_0 = arith.constant 0 : i32
    %c0_i32_1 = arith.constant 0 : i32
    return %c0_i32, %c0_i32_0 : i32, i32
  }
  func.func @transform_5(%arg0: i32, %arg1: i32) -> (i32, i32) {
    %c0_i32 = arith.constant 0 : i32
    %c0_i32_0 = arith.constant 0 : i32
    %c0_i32_1 = arith.constant 0 : i32
    return %c0_i32, %c0_i32_0 : i32, i32
  }
  func.func @transform_6(%arg0: i32, %arg1: i32) -> (i32, i32) {
    %c0_i32 = arith.constant 0 : i32
    %c0_i32_0 = arith.constant 0 : i32
    %c0_i32_1 = arith.constant 0 : i32
    return %c0_i32, %c0_i32_0 : i32, i32
  }
  func.func @transform_7(%arg0: i32, %arg1: i32) -> (i32, i32) {
    %c0_i32 = arith.constant 0 : i32
    %c0_i32_0 = arith.constant 0 : i32
    %c0_i32_1 = arith.constant 0 : i32
    return %c0_i32, %c0_i32_0 : i32, i32
  }
  func.func @transform_8(%arg0: i32, %arg1: i32) -> (i32, i32) {
    %c0_i32 = arith.constant 0 : i32
    %c0_i32_0 = arith.constant 0 : i32
    %c0_i32_1 = arith.constant 0 : i32
    return %c0_i32, %c0_i32_0 : i32, i32
  }
  func.func @transform_9(%arg0: i32, %arg1: i32) -> (i32, i32) {
    %c0_i32 = arith.constant 0 : i32
    %c0_i32_0 = arith.constant 0 : i32
    %c0_i32_1 = arith.constant 0 : i32
    return %c0_i32, %c0_i32_0 : i32, i32
  }
  func.func @transform_10(%arg0: i32, %arg1: i32) -> (i32, i32) {
    %c0_i32 = arith.constant 0 : i32
    %c0_i32_0 = arith.constant 0 : i32
    %c0_i32_1 = arith.constant 0 : i32
    return %c0_i32, %c0_i32_0 : i32, i32
  }
  func.func @transform_11(%arg0: i32, %arg1: i32) -> (i32, i32) {
    %c0_i32 = arith.constant 0 : i32
    %c0_i32_0 = arith.constant 0 : i32
    %c0_i32_1 = arith.constant 0 : i32
    return %c0_i32, %c0_i32_0 : i32, i32
  }
  func.func @transform_12(%arg0: i32, %arg1: i32) -> (i32, i32) {
    %c0_i32 = arith.constant 0 : i32
    %c0_i32_0 = arith.constant 0 : i32
    %c0_i32_1 = arith.constant 0 : i32
    return %c0_i32, %c0_i32_0 : i32, i32
  }
  func.func @transform_13(%arg0: i32, %arg1: i32) -> (i32, i32, i32) {
    %c0_i32 = arith.constant 0 : i32
    %c0_i32_0 = arith.constant 0 : i32
    %c0_i32_1 = arith.constant 0 : i32
    return %arg0, %c0_i32, %c0_i32_0 : i32, i32, i32
  }
  func.func @transform_14(%arg0: i32, %arg1: i32) -> (i32, i32, i32, i32) {
    %c0_i32 = arith.constant 0 : i32
    %c0_i32_0 = arith.constant 0 : i32
    %c0_i32_1 = arith.constant 0 : i32
    return %arg0, %arg1, %c0_i32, %c0_i32_0 : i32, i32, i32, i32
  }
}

</mosaic_0001>

<bundles_post_ra>
// kernel: tpu_custom_call.1
= control target key start
LH: loop header
LB: loop body
LE: loop exit
PB: predicated region body
PF: predicated region fallthrough
CT: control target
= control target key end

     0   :  { %s2157_s0 = inlined_call_operand.vmem [shape: f32[2,16,64], index: 0, kind: input, shape index: {}]   ;;  %s2158_s1 = inlined_call_operand.vmem [shape: bf16[4,64,48], index: 1, kind: input, shape index: {}]   ;;  %s2159_s2 = inlined_call_operand.vmem [shape: f32[4,1,48], index: 2, kind: input, shape index: {}]   ;;  %s2160_s3 = inlined_call_operand.vmem [shape: bf16[4,16,64], index: 3, kind: input, shape index: {}]   ;;  %s2161_s4 = inlined_call_operand.vmem [shape: f32[1,64], index: 4, kind: input, shape index: {}]   ;;  %s2162_s5 = inlined_call_operand.vmem [shape: f32[1,64], index: 5, kind: input, shape index: {}]   ;;  %s2163_s6 = inlined_call_operand.vmem [shape: f32[1,64], index: 6, kind: input, shape index: {}]   ;;  %s2164_s7 = inlined_call_operand.vmem [shape: bf16[64,64], index: 7, kind: input, shape index: {}]   ;;  %s2165_s8 = inlined_call_operand.vmem [shape: f32[1,64], index: 8, kind: input, shape index: {}]   ;;  %s2166_s9 = inlined_call_operand.vmem [shape: bf16[64,64], index: 9, kind: input, shape index: {}]   ;;  %s2167_s10 = inlined_call_operand.vmem [shape: f32[1,64], index: 10, kind: input, shape index: {}]   ;;  %s2168_s11 = inlined_call_operand.vmem [shape: f32[1,64], index: 11, kind: input, shape index: {}]   ;;  %s2169_s12 = inlined_call_operand.vmem [shape: f32[1,64], index: 12, kind: input, shape index: {}]   ;;  %s2170_s13 = inlined_call_operand.hbm [shape: f32[2,16,64], index: 13, kind: output, shape index: {0}]   ;;  %s2171_s14 = inlined_call_operand.hbm [shape: bf16[2,4,16,16], index: 14, kind: output, shape index: {1}]  }
   0x1   :  { %2184 = sst [smem:[#allocation17_spill]] %s2157_s0 }
   0x2   :  { %2185 = sst [smem:[#allocation18_spill]] %s2158_s1 }
   0x3   :  { %2186 = sst [smem:[#allocation19_spill]] %s2159_s2 }
   0x4   :  { %2187 = sst [smem:[#allocation20_spill]] %s2160_s3 }
   0x5   :  { %2188 = sst [smem:[#allocation21_spill]] %s2161_s4 }
   0x6   :  { %2189 = sst [smem:[#allocation22_spill]] %s2162_s5 }
   0x7   :  { %2190 = sst [smem:[#allocation23_spill]] %s2163_s6 }
   0x8   :  { %2191 = sst [smem:[#allocation24_spill]] %s2164_s7 }
   0x9   :  { %2192 = sst [smem:[#allocation25_spill]] %s2165_s8 }
   0xa   :  { %2193 = sst [smem:[#allocation26_spill]] %s2167_s10 }
   0xb   :  { %2194 = sst [smem:[#allocation27_spill]] %s2168_s11 }
   0xc   :  { %2195 = sst [smem:[#allocation28_spill]] %s2169_s12 }
   0xd   :  { %2196 = sst [smem:[#allocation29_spill]] %s2170_s13 }
   0xe   :  { %2197 = sst [smem:[#allocation30_spill]] %s2171_s14 }
   0xf   :  { %20 = vsyncpa [#allocation4], 0 }
  0x10   :  { %22 = vsyncpa [#allocation4 + $0x1], 0 }
  0x11   :  { %23 = vsyncpa [#allocation6], 0 }
  0x12   :  { %25 = vsyncpa [#allocation6 + $0x1], 0  ;;  %s1805_s29 = smov 0   ;;  %s1807_s30 = smov 0  }
  0x13   :  { %s1809_s15 = smov 0   ;;  %s1811_s16 = smov 0  }
  0x14   :  { %s1813_s17 = smov 0   ;;  %s1815_s18 = smov 0  }
  0x15   :  { %s1817_s19 = smov 0   ;;  %s1819_s20 = smov 0  }
  0x16   :  { %s1821_s21 = smov 0   ;;  %s1823_s22 = smov 0  }
  0x17   :  { %s1825_s23 = smov 0  }
  0x18 LB: > { %2198 = sst [smem:[#allocation9_spill]] %s1688_s16  ;;  %s1292_s24 = sadd.s32 4294967295, %s1716_s23   ;;  %s1716_s23 = sphi %s1825_s23, %s31_s23   ;;  %s1712_s22 = sphi %s1823_s22, %s2235_s22   ;;  %s1708_s21 = sphi %s1821_s21, %s2241_s21   ;;  %s1704_s20 = sphi %s1819_s20, %s2233_s20   ;;  %s1700_s19 = sphi %s1817_s19, %s2232_s19   ;;  %s1696_s18 = sphi %s1815_s18, %s2231_s18   ;;  %s1692_s17 = sphi %s1813_s17, %s2240_s17   ;;  %s1688_s16 = sphi %s1811_s16, %s2239_s16   ;;  %s1684_s15 = sphi %s1809_s15, %s2238_s15   ;;  %s1680_s30 = sphi %s1807_s30, %s2237_s30   ;;  %s1676_s29 = sphi %s1805_s29, %s2236_s29  }
  0x19   : > { %2199 = sst [smem:[#allocation10_spill]] %s1696_s18  ;;  %s1293_s25 = sadd.s32 4294967294, %s1716_s23  }
  0x1a   : > { %2200 = sst [smem:[#allocation11_spill]] %s1708_s21  ;;  %s40_s26 = sadd.s32 1, %s1708_s21 }
  0x1b   : > { %2201 = sst [smem:[#allocation12_spill]] %s1712_s22  ;;  %s43_s27 = sadd.s32 1, %s1712_s22 }
  0x1c   : > { %p41_p0 = scmp.ge.s32.totalorder %s40_s26, 4  ;;  %s343_s28 = sadd.s32 1, %s1696_s18 }
  0x1d   : > { %p353_p1 = scmp.ne.s32.totalorder %s1696_s18, %s1692_s17  ;;  %p1867_p2 = scmp.eq.s32.totalorder %s1292_s24, 7 }
  0x1e   : > { %s2243_s26 = smov (%p41_p0, %s40_s26), 0  ;;  %s2245_s27 = smov (!%p41_p0, %s43_s27), %s1712_s22 }
  0x1f   : > { %2203 = sst [smem:[#allocation13_spill]] %s2243_s26  ;;  %p1876_p3 = por %p1867_p2, %p353_p1 }
  0x20   : > { %p359_p4 = scmp.ne.s32.totalorder %s1692_s17, %s1688_s16  ;;  %p45_p5 = scmp.ge.s32.totalorder %s2245_s27, 2 }
  0x21   : > { %s2204_s13 = scalar_select %p1876_p3, 1, 0 }
  0x22   : > { %p1882_p6 = scmp.eq.s32.totalorder %s1293_s25, 7  ;;  %s367_s12 = ssub.s32 %s1708_s21, %s2243_s26 }
  0x23   : > { %2205 = sst [smem:[#allocation14_spill]] %s2204_s13  ;;  %s371_s11 = sadd.s32 1, %s1684_s15 }
  0x24   : > { %s2247_s27 = smov (%p45_p5, %s2245_s27), 0  ;;  %p1893_p7 = por %p1882_p6, %p359_p4 }
  0x25   : > { %2207 = sst [smem:[#allocation15_spill]] %s2247_s27  ;;  %p381_p8 = scmp.ne.s32.totalorder %s1684_s15, %s1680_s30 }
  0x26   : > { %s340_s16 = ssub.s32 %s1712_s22, %s2247_s27  ;;  %p387_p9 = scmp.ne.s32.totalorder %s1680_s30, %s1676_s29 }
  0x27   : > { %p341_p10 = scmp.eq.s32.totalorder %s340_s16, 0  ;;  %s368_s25 = sor.u32 %s367_s12, %s340_s16 }
  0x28   : > { %p369_p11 = scmp.eq.s32.totalorder %s368_s25, 0  ;;  %p1905_p12 = por %p381_p8, %p1867_p2 }
  0x29   : > { %s1910_s26 = scalar_select %p341_p10, %s1696_s18, %s343_s28  }
  0x2a   : > { %s1913_s21 = scalar_select %p369_p11, %s1684_s15, %s371_s11  }
  0x2b   : > { %2210 = sst [smem:[#allocation16_spill]] %s1910_s26  ;;  %p1917_p13 = por %p387_p9, %p1882_p6 }
  0x2c   : > { %p1296_p0 = scmp.ge.s32.totalorder %s1716_s23, 1  ;;  %p463_p1 = scmp.lt.s32.totalorder %s1716_s23, 9 }
  0x2e   : > { %p464_p4 = pnand %p1296_p0, %p463_p1 }
  0x2f   : > { %s2179_s12 = sand.u32 (!%p464_p4), 1, %s1692_s17   ;;  %p532_p2 = scmp.lt.s32.totalorder (!%p464_p4), %s1700_s19, 3  ;;  %v1718_v0 = vmov (!%p464_p4), 0.0   ;;  %vm1719_vm0 = vmmov (!%p464_p4), 0   ;;  %vm588_vm1 = vcmask (!%p464_p4), 523264   ;;  %vm637_vm2 = vcmask (!%p464_p4), 130048  }
  0x30   : > { %467 = sbr.rel (%p464_p4) target bundleno = 2528 (0x9e0), region = 72  ;;  %s1927_s11 = sshll.u32 (!%p464_p4), %s2179_s12, 4  ;;  %1373 = vmatprep.subr.bf16.mxu0 (!%p464_p4), %v1718_v0  ;;  %1381 = vmatprep.mubr.msk.bf16.mxu0 (!%p464_p4), %vm1719_vm0, %v1718_v0  ;;  %vm715_vm3 = vcmask (!%p464_p4), 125952  }
  0x31   : > { %p527_p5 = scmp.lt.s32.totalorder (!%p464_p4), %s1704_s20, 1  ;;  %1385 = vmatprep.subr.bf16.mxu1 (!%p464_p4), %v1718_v0  ;;  %1387 = vmatprep.mubr.msk.bf16.mxu1 (!%p464_p4), %vm1719_vm0, %v1718_v0  ;;  %s2212_s1 = sld [smem:[#allocation18_spill]] (!%p464_p4) }
  0x32   : > { %s2213_s0 = sld [smem:[#allocation17_spill]] (!%p464_p4)  ;;  %s2214_s2 = sld [smem:[#allocation19_spill]] (!%p464_p4) }
  0x33   : > { %s2215_s3 = sld [smem:[#allocation20_spill]] (!%p464_p4)  ;;  %p1317_p6 = scmp.ne.s32.totalorder (!%p464_p4), %s1700_s19, 0 }
  0x37   : > { %s1933_s14 = scalar_select %p532_p2, %s1700_s19, 3 }
  0x38   : > { %s528_s12 = scalar_select %p527_p5, %s1704_s20, 1 }
  0x39   : > { %s1347_s16 = sshll.u32 %s1933_s14, 5  ;;  %s539_s26 = scalar_lea.vmem %s2214_s2, %s1933_s14 }
  0x3a   : > { %s536_s25 = scalar_lea.vmem %s2212_s1, %s1347_s16  ;;  %s1346_s27 = sshll.u32 %s528_s12, 4  ;;  %v1305_v8 = vld [vmem:[%s539_s26] ss:$0 sm:$0xff] }
  0x3b   : > { %v1537_v1 = vld [vmem:[%s536_s25] sm:$0xff]   ;;  %v1538_v2 = vld [vmem:[%s536_s25 + $0x8] sm:$0xff]   ;;  %v1539_v3 = vld [vmem:[%s536_s25 + $0x10] sm:$0xff]   ;;  %s531_s18 = scalar_lea.vmem %s2213_s0, %s1346_s27  ;;  %s1721_s27 = smov 96  }
  0x3c   : > { %1374 = vmatpush3.bf16.msra.mxu0 %v1537_v1  ;;  %v1540_v4 = vld [vmem:[%s536_s25 + $0x18] sm:$0xff]   ;;  %v1943_v5 = vld [vmem:[%s531_s18] sm:$0xff]  ;;  %v1945_v6 = vld [vmem:[%s531_s18 + $0x8] sm:$0xff]  ;;  %s1720_s18 = smov 112   ;;  %s1348_s16 = sshll.u32 %s1933_s14, 3 }
  0x3d   : > { %1375 = vmatprep.subr.bf16.mxu0 %v1718_v0  ;;  %v548_v7 = vpack.c.bf16 %v1945_v6, %v1943_v5  ;;  %s544_s25 = scalar_lea.vmem %s2215_s3, %s1348_s16  ;;  %s2183_s12 = sand.u32 1, %s1680_s30  }
  0x3e   : > { %v1541_v34 = vld [vmem:[%s544_s25] sm:$0xff]   ;;  %s1298_s22 = sshll.u32 %s2183_s12, 3  ;;  %s1976_s26 = scalar_lea.vmem [#allocation3], %s1927_s11 }
  0x3f   : > { %s1969_s14 = scalar_lea.vmem [#allocation5], %s1298_s22 }
  0x40   : > { %1376 = vmatpush3.bf16.msra.mxu0 %v1538_v2 }
  0x41   : > { %1377 = vmatprep.subr.bf16.mxu0 %v1718_v0 }
  0x44   : > { %1378 = vmatpush3.bf16.msra.mxu0 %v1539_v3 }
  0x45   : > { %1379 = vmatprep.subr.bf16.mxu0 %v1718_v0 }
  0x48   : > { %1380 = vmatpush3.bf16.msra.mxu0 %v1540_v4 }
  0x49   : > { %1397 = vmatprep.subr.bf16.mxu0 %v1718_v0 }
  0x4b   : > { %1382 = vmatmul.mubr.msk.bf16.vlgmr.msra.gmra.mrb[0].mxu0 %vm588_vm1, %v548_v7 }
  0x4c   : > { %1399 = vmatprep.mubr.msk.bf16.mxu0 %vm1719_vm0, %v1718_v0  ;;  %1398 = vmatpush3.bf16.msra.mxu0 %v1541_v34 }
 0x11e   : > { %v626_v9 = vpop.f32.mrb[0].mxu0 }
 0x11f   : > { %v1383_v10 = vpop.f32.mrb[1].mxu0  ;;  %v627_v12 = vadd.f32 %v1305_v8, %v626_v9 }
 0x120   : > { %v629_v11 = vpop.f32.mrb[2].mxu0 }
 0x121   : > { %v630_v13 = vadd.f32 %v1305_v8, %v629_v11  ;;  %v1384_v14 = vpop.f32.mrb[3].mxu0 }
 0x123   : > { %v633_v15 = vpack.c.bf16 %v630_v13, %v627_v12 }
 0x125   : > { %635 = vrot.lane.b32.xlu0 %v633_v15, %s1720_s18 }
 0x197   : > { %v636_v16 = vpop.permute.xlu0 %635 }
 0x198   : > { %v642_v17 = vsel %vm637_vm2, %v636_v16, 0 }
 0x199   : > { %1386 = vmatpush3.bf16.xpose.msra.mxu1 %v642_v17 }
 0x19a   : > { %1391 = vmatprep.subr.bf16.mxu1 %v1718_v0 }
 0x1a0   : > { %1388 = vmatmul.mubr.msk.bf16.vlgmr.msra.gmra.mrb[0].mxu1 %vm637_vm2, %v633_v15 }
 0x1a1   : > { %1393 = vmatprep.mubr.msk.bf16.mxu1 %vm1719_vm0, %v1718_v0 }
 0x273   : > { %v678_v18 = vpop.f32.mrb[0].mxu1 }
 0x274   : > { %v1389_v19 = vpop.f32.mrb[1].mxu1  ;;  %v685_v20 = vsel %vm637_vm2, %v678_v18, -inf }
 0x275   : > { %686 = vmax.xlane.f32.xlu0 %v685_v20  ;;  %v681_v21 = vpop.f32.mrb[2].mxu1 }
 0x276   : > { %v1390_v22 = vpop.f32.mrb[3].mxu1  ;;  %v688_v23 = vsel %vm637_vm2, %v681_v21, -inf }
 0x277   : > { %689 = vmax.xlane.f32.xlu1 %v688_v23 }
 0x302   : > { %v687_v24 = vpop.xlane.xlu0 %686 }
 0x303   : > { %v691_v25 = vsub.f32 %v678_v18, %v687_v24 }
 0x304   : > { %v690_v26 = vpop.xlane.xlu1 %689 }
 0x305   : > { %v693_v27 = vmul.f32 1.442695, %v691_v25  ;;  %v692_v28 = vsub.f32 %v681_v21, %v690_v26 }
 0x307   : > { %1542 = vpow2.f32 %v693_v27  ;;  %v695_v29 = vmul.f32 1.442695, %v692_v28 }
 0x309   : > { %1544 = vpow2.f32 %v695_v29 }
 0x311   : > { %v1543_v30 = vpop.eup %1542 }
 0x312   : > { %v697_v31 = vsel %vm637_vm2, %v1543_v30, 0.0 }
 0x313   : > { %v1545_v32 = vpop.eup %1544  ;;  %698 = vadd.xlane.f32.xlu1 %v697_v31 }
 0x314   : > { %v700_v33 = vsel %vm637_vm2, %v1545_v32, 0.0 }
 0x317   : > { %701 = vadd.xlane.f32.xlu1 %v700_v33 }
 0x328   : > { %718 = vrot.lane.b32.xlu1 %v633_v15, %s1721_s27 }
 0x3a0   : > { %v699_v35 = vpop.xlane.xlu1 %698 }
 0x3a1   : > { %1546 = vrcp.f32 %v699_v35 }
 0x3a4   : > { %v702_v36 = vpop.xlane.xlu1 %701 }
 0x3a5   : > { %1548 = vrcp.f32 %v702_v36 }
 0x3a8   : > { %v719_v37 = vpop.permute.xlu1 %718 }
 0x3a9   : > { %1392 = vmatpush3.bf16.msra.mxu1 %v719_v37 }
 0x3ab   : > { %v1547_v38 = vpop.eup %1546 }
 0x3ac   : > { %v705_v39 = vmul.f32 %v1547_v38, %v1543_v30 }
 0x3ae   : > { %v1349_v40 = vpack.c.bf16 %v705_v39, %v705_v39 }
 0x3af   : > { %v1549_v41 = vpop.eup %1548 }
 0x3b0   : > { %716 = vst.msk [vmem:[%s1969_s14] sm:$0xf] %vm715_vm3, %v1349_v40  ;;  %v706_v42 = vmul.f32 %v1549_v41, %v1545_v32 }
 0x3b2   : > { %v1350_v43 = vpack.c.bf16 %v706_v42, %v706_v42  ;;  %v707_v44 = vpack.c.bf16 %v706_v42, %v705_v39 }
 0x3b4   : > { %717 = vst.msk [vmem:[%s1969_s14 + $0x4] sm:$0xf] %vm715_vm3, %v1350_v43  ;;  %1394 = vmatmul.mubr.msk.bf16.vlgmr.msra.gmra.mrb[4].mxu1 %vm637_vm2, %v707_v44 }
 0x487   : > { %v758_v45 = vpop.f32.mrb[4].mxu1 }
 0x488   : > { %v1395_v46 = vpop.f32.mrb[5].mxu1 }
 0x489   : > { %v761_v47 = vpop.f32.mrb[6].mxu1 }
 0x48a   : > { %v765_v48 = vpack.c.bf16 %v761_v47, %v758_v45  ;;  %v1396_v49 = vpop.f32.mrb[7].mxu1 }
 0x48c   : > { %1400 = vmatmul.mubr.msk.bf16.vlgmr.msra.gmra.mrb[4].mxu0 %vm637_vm2, %v765_v48 }
 0x55c   : > { %821 = sbr.rel (%p1317_p6) target bundleno = 1379 (0x563), region = 76 }
 0x55f   : > { %v811_v50 = vpop.f32.mrb[4].mxu0 }
 0x560   : > { %v1401_v51 = vpop.f32.mrb[5].mxu0  ;;  %822 = vst.msk [vmem:[#allocation2] sm:$0xff] (!%p1317_p6), %vm588_vm1, %v811_v50 }
 0x561   : > { %v814_v52 = vpop.f32.mrb[6].mxu0 }
 0x562   : > { %v1402_v53 = vpop.f32.mrb[7].mxu0  ;;  %823 = vst.msk [vmem:[#allocation2 + $0x8] sm:$0xff] (!%p1317_p6), %vm588_vm1, %v814_v52 }
 0x563 PF: > { %p1318_p8 = scmp.le.s32.totalorder %s1700_s19, 0 }
 0x565   : > { %827 = sbr.rel (%p1318_p8) target bundleno = 1389 (0x56d), region = 80 }
 0x567   : > { %v828_v54 = vld [vmem:[#allocation2] sm:$0xff] (!%p1318_p8) }
 0x568   : > { %v830_v56 = vadd.f32 (!%p1318_p8), %v828_v54, %v811_v50 }
 0x569   : > { %v829_v55 = vld [vmem:[#allocation2 + $0x8] sm:$0xff] (!%p1318_p8) }
 0x56a   : > { %v831_v57 = vadd.f32 (!%p1318_p8), %v829_v55, %v814_v52  ;;  %832 = vst.msk [vmem:[#allocation2] sm:$0xff] (!%p1318_p8), %vm588_vm1, %v830_v56 }
 0x56c   : > { %833 = vst.msk [vmem:[#allocation2 + $0x8] sm:$0xff] %vm588_vm1, %v831_v57 }
 0x56d PF: > { %p1319_p9 = scmp.ne.s32.totalorder %s1700_s19, 3 }
 0x56e   : > { %s2216_s4 = sld [smem:[#allocation21_spill]] (!%p1319_p9)  ;;  %s2217_s7 = sld [smem:[#allocation24_spill]] (!%p1319_p9)  ;;  %v1722_v14 = vmov (!%p1319_p9), 0.0   ;;  %vm1723_vm4 = vmmov (!%p1319_p9), 0   ;;  %v1554_v18 = vld [vmem:[%s2166_s9] sm:$0xff] (!%p1319_p9)   ;;  %v1555_v19 = vld [vmem:[%s2166_s9 + $0x8] sm:$0xff] (!%p1319_p9)  }
 0x56f   : > { %837 = sbr.rel (%p1319_p9) target bundleno = 2472 (0x9a8), region = 84  ;;  %1403 = vmatprep.subr.bf16.mxu0 (!%p1319_p9), %v1722_v14  ;;  %1411 = vmatprep.mubr.msk.bf16.mxu0 (!%p1319_p9), %vm1723_vm4, %v1722_v14  ;;  %s2218_s5 = sld [smem:[#allocation22_spill]] (!%p1319_p9)  ;;  %v1556_v37 = vld [vmem:[%s2166_s9 + $0x10] sm:$0xff] (!%p1319_p9)   ;;  %v1557_v38 = vld [vmem:[%s2166_s9 + $0x18] sm:$0xff] (!%p1319_p9)  }
 0x570   : > { %1415 = vmatprep.subr.bf16.mxu1 (!%p1319_p9), %v1722_v14  ;;  %1423 = vmatprep.mubr.msk.bf16.mxu1 (!%p1319_p9), %vm1723_vm4, %v1722_v14  ;;  %s2219_s6 = sld [smem:[#allocation23_spill]] (!%p1319_p9)  ;;  %s2220_s11 = sld [smem:[#allocation25_spill]] (!%p1319_p9) }
 0x571   : > { %1416 = vmatpush3.bf16.msra.mxu1 (!%p1319_p9), %v1554_v18  ;;  %s2221_s16 = sld [smem:[#allocation26_spill]] (!%p1319_p9)  ;;  %s2222_s25 = sld [smem:[#allocation27_spill]] (!%p1319_p9) }
 0x572   : > { %v838_v58 = vld [vmem:[#allocation2] sm:$0xff] (!%p1319_p9)  ;;  %1417 = vmatprep.subr.bf16.mxu1 (!%p1319_p9), %v1722_v14  ;;  %s2223_s18 = sld [smem:[#allocation28_spill]] (!%p1319_p9) }
 0x573   : > { %v839_v60 = vld [vmem:[#allocation2 + $0x8] sm:$0xff] (!%p1319_p9) }
 0x574   : > { %v1320_v59 = vld [vmem:[%s2216_s4] ss:$0 sm:$0xff] (!%p1319_p9)  ;;  %v1551_v15 = vld [vmem:[%s2217_s7 + $0x8] sm:$0xff] (!%p1319_p9)   ;;  %v1552_v16 = vld [vmem:[%s2217_s7 + $0x10] sm:$0xff] (!%p1319_p9)  }
 0x575   : > { %v847_v61 = vadd.f32 (!%p1319_p9), %v1320_v59, %v838_v58  ;;  %v848_v62 = vadd.f32 (!%p1319_p9), %v1320_v59, %v839_v60  ;;  %v1553_v17 = vld [vmem:[%s2217_s7 + $0x18] sm:$0xff] (!%p1319_p9)   ;;  %1418 = vmatpush3.bf16.msra.mxu1 (!%p1319_p9), %v1555_v19  ;;  %v1321_v28 = vld [vmem:[%s2218_s5] ss:$0 sm:$0xff] (!%p1319_p9) }
 0x576   : > { %1419 = vmatprep.subr.bf16.mxu1 %v1722_v14  ;;  %v1322_v32 = vld [vmem:[%s2219_s6] ss:$0 sm:$0xff] }
 0x577   : > { %v849_v63 = vadd.f32 %v847_v61, %v1943_v5  ;;  %v850_v0 = vadd.f32 %v848_v62, %v1945_v6  ;;  %v1550_v6 = vld [vmem:[%s2217_s7] sm:$0xff]  }
 0x578   : > { %1404 = vmatpush3.bf16.msra.mxu0 %v1550_v6  ;;  %v1323_v39 = vld [vmem:[%s2220_s11] ss:$0 sm:$0xff] }
 0x579   : > { %v851_v1 = vsel %vm588_vm1, %v849_v63, 0.0  ;;  %v854_v2 = vsel %vm588_vm1, %v850_v0, 0.0  ;;  %1405 = vmatprep.subr.bf16.mxu0 %v1722_v14  ;;  %1420 = vmatpush3.bf16.msra.mxu1 %v1556_v37  ;;  %v1329_v49 = vld [vmem:[%s2221_s16] ss:$0 sm:$0xff] }
 0x57a   : > { %852 = vadd.xlane.f32.xlu0 %v851_v1  ;;  %1421 = vmatprep.subr.bf16.mxu1 %v1722_v14  ;;  %v1335_v6 = vld [vmem:[%s2222_s25] ss:$0 sm:$0xff] }
 0x57c   : > { %1406 = vmatpush3.bf16.msra.mxu0 %v1551_v15 }
 0x57d   : > { %1407 = vmatprep.subr.bf16.mxu0 %v1722_v14  ;;  %1422 = vmatpush3.bf16.msra.mxu1 %v1557_v38 }
 0x57e   : > { %855 = vadd.xlane.f32.xlu0 %v854_v2 }
 0x580   : > { %1408 = vmatpush3.bf16.msra.mxu0 %v1552_v16  ;;  %v1336_v16 = vld [vmem:[%s2223_s18] ss:$0 sm:$0xff] }
 0x581   : > { %1409 = vmatprep.subr.bf16.mxu0 %v1722_v14 }
 0x584   : > { %1410 = vmatpush3.bf16.msra.mxu0 %v1553_v17 }
 0x607   : > { %v853_v3 = vpop.xlane.xlu0 %852 }
 0x608   : > { %v858_v4 = vmul.f32 0.015625, %v853_v3 }
 0x60a   : > { %v860_v7 = vsub.f32 %v849_v63, %v858_v4 }
 0x60b   : > { %v856_v8 = vpop.xlane.xlu0 %855 }
 0x60c   : > { %v859_v9 = vmul.f32 0.015625, %v856_v8  ;;  %v862_v10 = vmul.f32 %v860_v7, %v860_v7 }
 0x60e   : > { %v861_v11 = vsub.f32 %v850_v0, %v859_v9  ;;  %v864_v12 = vsel %vm588_vm1, %v862_v10, 0.0 }
 0x60f   : > { %865 = vadd.xlane.f32.xlu1 %v864_v12 }
 0x610   : > { %v863_v13 = vmul.f32 %v861_v11, %v861_v11 }
 0x612   : > { %v867_v5 = vsel %vm588_vm1, %v863_v13, 0.0 }
 0x613   : > { %868 = vadd.xlane.f32.xlu1 %v867_v5 }
 0x69c   : > { %v866_v20 = vpop.xlane.xlu1 %865 }
 0x69d   : > { %v870_v21 = vmul.f32 0.015625, %v866_v20 }
 0x69f   : > { %v872_v22 = vadd.f32 1e-05, %v870_v21 }
 0x6a0   : > { %v869_v23 = vpop.xlane.xlu1 %868 }
 0x6a1   : > { %1558 = vrsqrt.f32 %v872_v22  ;;  %v871_v24 = vmul.f32 0.015625, %v869_v23 }
 0x6a3   : > { %v873_v25 = vadd.f32 1e-05, %v871_v24 }
 0x6a5   : > { %1560 = vrsqrt.f32 %v873_v25 }
 0x6ab   : > { %v1559_v26 = vpop.eup %1558 }
 0x6ac   : > { %v876_v27 = vmul.f32 %v1559_v26, %v860_v7 }
 0x6ae   : > { %v885_v31 = vmul.f32 %v1321_v28, %v876_v27 }
 0x6af   : > { %v1561_v29 = vpop.eup %1560 }
 0x6b0   : > { %v877_v30 = vmul.f32 %v1561_v29, %v861_v11  ;;  %v894_v34 = vadd.f32 %v1322_v32, %v885_v31 }
 0x6b2   : > { %v886_v33 = vmul.f32 %v1321_v28, %v877_v30 }
 0x6b4   : > { %v895_v35 = vadd.f32 %v1322_v32, %v886_v33 }
 0x6b6   : > { %v896_v36 = vpack.c.bf16 %v895_v35, %v894_v34 }
 0x6b8   : > { %1412 = vmatmul.mubr.msk.bf16.vlgmr.msra.gmra.mrb[0].mxu0 %vm588_vm1, %v896_v36 }
 0x78b   : > { %v973_v40 = vpop.f32.mrb[0].mxu0 }
 0x78c   : > { %v974_v41 = vadd.f32 %v1323_v39, %v973_v40  ;;  %v1413_v42 = vpop.f32.mrb[1].mxu0 }
 0x78d   : > { %v976_v43 = vpop.f32.mrb[2].mxu0 }
 0x78e   : > { %v977_v44 = vadd.f32 %v1323_v39, %v976_v43  ;;  %v1414_v45 = vpop.f32.mrb[3].mxu0  ;;  %v980_v46 = vmax.f32 %v974_v41, 0.0 }
 0x790   : > { %v981_v47 = vmax.f32 %v977_v44, 0.0 }
 0x792   : > { %v982_v48 = vpack.c.bf16 %v981_v47, %v980_v46 }
 0x794   : > { %1424 = vmatmul.mubr.msk.bf16.vlgmr.msra.gmra.mrb[0].mxu1 %vm588_vm1, %v982_v48 }
 0x867   : > { %v1059_v50 = vpop.f32.mrb[0].mxu1 }
 0x868   : > { %v1060_v51 = vadd.f32 %v1329_v49, %v1059_v50  ;;  %v1425_v52 = vpop.f32.mrb[1].mxu1 }
 0x869   : > { %v1062_v53 = vpop.f32.mrb[2].mxu1 }
 0x86a   : > { %v1063_v54 = vadd.f32 %v1329_v49, %v1062_v53  ;;  %v1426_v55 = vpop.f32.mrb[3].mxu1  ;;  %v1066_v56 = vadd.f32 %v1060_v51, %v894_v34 }
 0x86c   : > { %v1068_v57 = vsel %vm588_vm1, %v1066_v56, 0.0  ;;  %v1067_v58 = vadd.f32 %v1063_v54, %v895_v35 }
 0x86d   : > { %1069 = vadd.xlane.f32.xlu0 %v1068_v57 }
 0x86e   : > { %v1071_v59 = vsel %vm588_vm1, %v1067_v58, 0.0 }
 0x86f   : > { %1072 = vadd.xlane.f32.xlu1 %v1071_v59 }
 0x8fa   : > { %v1070_v60 = vpop.xlane.xlu0 %1069 }
 0x8fb   : > { %v1074_v61 = vmul.f32 0.015625, %v1070_v60 }
 0x8fc   : > { %v1073_v62 = vpop.xlane.xlu1 %1072 }
 0x8fd   : > { %v1076_v63 = vsub.f32 %v1066_v56, %v1074_v61  ;;  %v1075_v0 = vmul.f32 0.015625, %v1073_v62 }
 0x8ff   : > { %v1077_v1 = vsub.f32 %v1067_v58, %v1075_v0  ;;  %v1078_v2 = vmul.f32 %v1076_v63, %v1076_v63 }
 0x901   : > { %v1080_v3 = vsel %vm588_vm1, %v1078_v2, 0.0  ;;  %v1079_v4 = vmul.f32 %v1077_v1, %v1077_v1 }
 0x902   : > { %1081 = vadd.xlane.f32.xlu0 %v1080_v3 }
 0x903   : > { %v1083_v7 = vsel %vm588_vm1, %v1079_v4, 0.0 }
 0x904   : > { %1084 = vadd.xlane.f32.xlu1 %v1083_v7 }
 0x98f   : > { %v1082_v8 = vpop.xlane.xlu0 %1081 }
 0x990   : > { %v1086_v9 = vmul.f32 0.015625, %v1082_v8 }
 0x991   : > { %v1085_v10 = vpop.xlane.xlu1 %1084 }
 0x992   : > { %v1088_v11 = vadd.f32 1e-05, %v1086_v9  ;;  %v1087_v12 = vmul.f32 0.015625, %v1085_v10 }
 0x994   : > { %1562 = vrsqrt.f32 %v1088_v11  ;;  %v1089_v13 = vadd.f32 1e-05, %v1087_v12 }
 0x996   : > { %1564 = vrsqrt.f32 %v1089_v13 }
 0x99e   : > { %v1563_v5 = vpop.eup %1562 }
 0x99f   : > { %v1092_v14 = vmul.f32 %v1563_v5, %v1076_v63 }
 0x9a0   : > { %v1565_v15 = vpop.eup %1564 }
 0x9a1   : > { %v1101_v17 = vmul.f32 %v1335_v6, %v1092_v14  ;;  %v1093_v18 = vmul.f32 %v1565_v15, %v1077_v1 }
 0x9a3   : > { %v1110_v19 = vadd.f32 %v1336_v16, %v1101_v17  ;;  %v1102_v20 = vmul.f32 %v1335_v6, %v1093_v18 }
 0x9a5   : > { %1112 = vst.msk [vmem:[%s1976_s26] sm:$0xff] %vm588_vm1, %v1110_v19  ;;  %v1111_v21 = vadd.f32 %v1336_v16, %v1102_v20 }
 0x9a7   : > { %1113 = vst.msk [vmem:[%s1976_s26 + $0x8] sm:$0xff] %vm588_vm1, %v1111_v21 }
 0x9a8 PF: > { %s1351_s16 = sshll.u32 %s1704_s20, 8  ;;  %s2225_s25 = sld [smem:[#allocation29_spill]] }
 0x9a9   : > { %s1133_s11 = sshll.u32 %s1976_s26, 4  ;;  %s2226_s18 = sand.u32 1, %s1692_s17   ;;  %s2053_s11 = int_to_ptr.vmem [resolvable:$true] %s1133_s11 }
 0x9aa   : > { %s2057_s12 = scalar_lea.sflag [#allocation4], %s2226_s18  ;;  %s1566_s0 = scalar_lea.vmem %s2053_s11, 256 }
 0x9ab   : > { %p1567_p10 = scmp.ne.s32.totalorder %s2053_s11, %s1566_s0  ;;  %s1724_s1 = smov [#allocation3]  }
 0x9ac   : > { %s1570_s2 = sshll.u32 %s1724_s1, 4  ;;  %s1571_s2 = int_to_ptr.vmem [resolvable:$false] %s1570_s2 }
 0x9ad   : > { %p1568_p11 = pnand %p1567_p10, %p1876_p3  ;;  %s1572_s28 = scalar_lea.vmem %s1571_s2, 512 }
 0x9ae   : > { %s2050_s22 = scalar_lea.hbm %s2225_s25, %s1351_s16  ;;  %p1573_p1 = scmp.lt.s32.totalorder %s2053_s11, %s1571_s2 }
 0x9af   : > { %p1569_p0 = pneg %p1568_p11  ;;  %p1574_p4 = scmp.lt.s32.totalorder %s1572_s28, %s1566_s0 }
 0x9b1   : > { %p1575_p2 = por %p1574_p4, %p1573_p1 }
 0x9b3   : > { %p1576_p5 = pnand %p1575_p2, %p1569_p0 }
 0x9b5   : > { %1579 = shalt.err (!%p1576_p5)
}
 0x9b6   : > { %s1580_s26 = scalar_lea.hbm %s2050_s22, 256  ;;  %s1584_s1 = scalar_lea.hbm %s2225_s25, 512 }
 0x9b7   : > { %p1581_p6 = scmp.ne.s32.totalorder %s2050_s22, %s1580_s26  ;;  %p1585_p10 = scmp.lt.u32.totalorder %s2050_s22, %s2225_s25 }
 0x9b8   : > { %p1586_p11 = scmp.lt.u32.totalorder %s1584_s1, %s1580_s26  ;;  %p1588_p1 = scmp.lt.u32.totalorder %s1580_s26, %s2050_s22 }
 0x9b9   : > { %p1582_p8 = pnand %p1581_p6, %p1876_p3 }
 0x9ba   : > { %p1587_p0 = por %p1586_p11, %p1585_p10 }
 0x9bb   : > { %p1583_p9 = pneg %p1582_p8 }
 0x9bc   : > { %p1589_p4 = por %p1588_p1, %p1587_p0 }
 0x9be   : > { %p1590_p2 = pnand %p1589_p4, %p1583_p9 }
 0x9c0   : > { %1593 = shalt.err (!%p1590_p2)
}
 0x9c1   : > { %s1725_s0 = smov 128   ;;  %s1726_s28 = smov 8  }
 0x9c2   : > { %1427 = dma.vmem_to_hbm [thread:$0]  (%p1876_p3), %s2053_s11, 256, %s2050_s22, %s2057_s12, %s1725_s0, %s1725_s0, %s1726_s28  }
 0x9c3   : > { %s1341_s16 = sshll.u32 %s1700_s19, 1  ;;  %s1342_s24 = sshll.u32 %s1704_s20, 3 }
 0x9c4   : > { %s1148_s1 = sadd.s32 %s1342_s24, %s1341_s16  ;;  %s1151_s26 = sshll.u32 %s1969_s14, 4  ;;  %s2084_s26 = int_to_ptr.vmem [resolvable:$true] %s1151_s26 }
 0x9c5   : > { %s1343_s18 = sshll.u32 %s1148_s1, 6  ;;  %s2227_s4 = sld [smem:[#allocation30_spill]] }
 0x9c6   : > { %s2228_s6 = sand.u32 1, %s1680_s30   ;;  %s1594_s27 = scalar_lea.vmem %s2084_s26, 128 }
 0x9c7   : > { %s2093_s7 = scalar_lea.sflag [#allocation6], %s2228_s6  ;;  %p1595_p3 = scmp.ne.s32.totalorder %s2084_s26, %s1594_s27 }
 0x9c8   : > { %s1727_s19 = smov [#allocation5]  }
 0x9c9   : > { %p1596_p5 = pnand %p1595_p3, %p1905_p12  ;;  %s1598_s20 = sshll.u32 %s1727_s19, 4  ;;  %s1599_s20 = int_to_ptr.vmem [resolvable:$false] %s1598_s20 }
 0x9ca   : > { %s1600_s12 = scalar_lea.vmem %s1599_s20, 256  ;;  %p1601_p8 = scmp.lt.s32.totalorder %s2084_s26, %s1599_s20 }
 0x9cb   : > { %s2089_s5 = scalar_lea.hbm %s2227_s4, %s1343_s18  ;;  %p1597_p6 = pneg %p1596_p5 }
 0x9cc   : > { %p1602_p9 = scmp.lt.s32.totalorder %s1600_s12, %s1594_s27 }
 0x9ce   : > { %p1603_p10 = por %p1602_p9, %p1601_p8 }
 0x9d0   : > { %p1604_p11 = pnand %p1603_p10, %p1597_p6 }
 0x9d2   : > { %1607 = shalt.err (!%p1604_p11)
}
 0x9d3   : > { %s1608_s3 = scalar_lea.hbm %s2089_s5, 128  ;;  %s1612_s22 = scalar_lea.hbm %s2227_s4, 1024 }
 0x9d4   : > { %p1609_p0 = scmp.ne.s32.totalorder %s2089_s5, %s1608_s3  ;;  %p1613_p2 = scmp.lt.u32.totalorder %s2089_s5, %s2227_s4 }
 0x9d5   : > { %p1614_p3 = scmp.lt.u32.totalorder %s1612_s22, %s1608_s3  ;;  %p1616_p6 = scmp.lt.u32.totalorder %s1608_s3, %s2089_s5 }
 0x9d6   : > { %p1610_p1 = pnand %p1609_p0, %p1905_p12 }
 0x9d7   : > { %p1615_p5 = por %p1614_p3, %p1613_p2 }
 0x9d8   : > { %p1611_p4 = pneg %p1610_p1 }
 0x9d9   : > { %p1617_p8 = por %p1616_p6, %p1615_p5 }
 0x9db   : > { %p1618_p9 = pnand %p1617_p8, %p1611_p4 }
 0x9dd   : > { %1621 = shalt.err (!%p1618_p9)
}
 0x9de   : > { %s1728_s28 = smov 64   ;;  %s1729_s16 = smov 4  }
 0x9df   : > { %1428 = dma.vmem_to_hbm [thread:$0]  (%p1905_p12), %s2084_s26, 128, %s2089_s5, %s2093_s7, %s1728_s28, %s1728_s28, %s1729_s16  }
 0x9e0 PF: > { %s2229_s24 = sld [smem:[#allocation9_spill]]  ;;  %p1438_p10 = scmp.ge.s32.totalorder %s1716_s23, 2 }
 0x9e2   : > { %p1432_p11 = pnand %p1438_p10, %p1893_p7 }
 0x9e6   : > { %s1166_s1 = sand.u32 1, %s2229_s24  }
 0x9e7   : > { %s1167_s18 = scalar_lea.sflag [#allocation4], %s1166_s1 }
 0x9e8   : > { %1667 = dma.done.wait (!%p1432_p11), %s1167_s18, 256  }
 0x9e9   : > { %1669 = vsyncadd (!%p1432_p11), %s1167_s18, 4294967040  ;;  %s1175_s2 = sand.u32 1, %s1676_s29   ;;  %p1435_p0 = pnand %p1438_p10, %p1917_p13 }
 0x9ea   : > { %s1176_s27 = scalar_lea.sflag [#allocation6], %s1175_s2 }
 0x9eb   : > { %1671 = dma.done.wait (!%p1435_p0), %s1176_s27, 128  }
 0x9ec   : > { %1673 = vsyncadd (!%p1435_p0), %s1176_s27, 4294967168  ;;  %s31_s23 = sadd.s32 1, %s1716_s23   ;;  %s2230_s5 = sld [smem:[#allocation10_spill]] }
 0x9ed   : > { %p28_p12 = scmp.ge.s32.totalorder %s31_s23, 10   ;;  %s2231_s18 = sld [smem:[#allocation16_spill]] }
 0x9ee   : > { %s2232_s19 = sld [smem:[#allocation11_spill]]  ;;  %s2233_s20 = sld [smem:[#allocation12_spill]] }
 0x9ef   : > { %s2234_s7 = sld [smem:[#allocation13_spill]]  ;;  %s2235_s22 = sld [smem:[#allocation15_spill]] }
 0x9f0   : > { %s2236_s29 = smov %s1680_s30  ;;  %s2237_s30 = smov %s1684_s15 }
 0x9f1   : > { %s2238_s15 = smov %s1913_s21  ;;  %s2239_s16 = smov %s1692_s17 }
 0x9f2   : > { %s2240_s17 = smov %s2230_s5  ;;  %30 = sbr.rel (!%p28_p12) target bundleno = 24 (0x18), region = 145 }
 0x9f5   : > { %s2241_s21 = smov %s2234_s7 }
 0x9f9   :  { %1181 = vsyncpa [#allocation4], 1 }
 0x9fa   :  { %1183 = vsyncpa [#allocation4 + $0x1], 1 }
 0x9fb   :  { %1184 = vsyncpa [#allocation6], 1 }
 0x9fc   :  { %1186 = vsyncpa [#allocation6 + $0x1], 1 }

</bundles_post_ra>
